<compile_context>
chip_gen: v7x
topology: tpu7x:2x2x1
jax: 0.10.0
libtpu: 0.0.40
codegen_flags: <defaults>
</compile_context>

<pallas_src>
import functools

import jax
import jax.numpy as jnp
from jax.experimental import pallas as pl
from jax.experimental.pallas import tpu as pltpu


LANE = 128


def _round_up(x, m):
    return (x + m - 1) // m * m


# ---------------------------------------------------------------------------
# Kernels
# ---------------------------------------------------------------------------
def _conv_stats_kernel(inv_m, eps, patches_ref, w_ref, gamma_ref, beta_ref,
                       y_ref, stats_ref):
    """Pass 1: conv tile (MXU) + per-channel sum / sum-of-squares accumulation.

    stats_ref is a VMEM-resident (2, Cp) accumulator across the grid axis; at the
    last grid step it is overwritten with the folded BN (scale, shift) rows.
    """
    i = pl.program_id(0)

    # Conv as im2col matmul: bf16 inputs, f32 accumulation on the MXU.
    y = jnp.dot(patches_ref[...], w_ref[...], preferred_element_type=jnp.float32)
    y_ref[...] = y

    @pl.when(i == 0)
    def _():
        stats_ref[...] = jnp.zeros_like(stats_ref)

    tile_sum = jnp.sum(y, axis=0, keepdims=True)       # (1, Cp)
    tile_sq = jnp.sum(y * y, axis=0, keepdims=True)    # (1, Cp)
    stats_ref[...] = stats_ref[...] + jnp.concatenate([tile_sum, tile_sq], axis=0)

    # Finalize: fold BatchNorm into a single per-channel scale/shift.
    @pl.when(i == pl.num_programs(0) - 1)
    def _():
        stats = stats_ref[...]
        mean = stats[0:1, :] * inv_m
        var = stats[1:2, :] * inv_m - mean * mean       # biased variance (training BN)
        inv_std = jax.lax.rsqrt(var + eps)
        scale = gamma_ref[...] * inv_std
        shift = beta_ref[...] - mean * scale
        stats_ref[...] = jnp.concatenate([scale, shift], axis=0)


def _normalize_kernel(y_ref, ss_ref, out_ref):
    """Pass 2: out = y * scale + shift (single FMA per element, lane-dense)."""
    ss = ss_ref[...]
    out_ref[...] = (y_ref[...] * ss[0:1, :] + ss[1:2, :]).astype(out_ref.dtype)


# ---------------------------------------------------------------------------
# Wrapper
# ---------------------------------------------------------------------------
def _pick_block_m(m_rows, k, cp, vmem_budget_bytes):
    """Largest M-tile whose double-buffered working set fits the VMEM budget."""
    per_row = max(k * 2 + cp * 4,      # pass 1: bf16 patches in + f32 y out
                  2 * cp * 4)          # pass 2: f32 y in + f32 out
    tm = vmem_budget_bytes // (2 * per_row)             # x2 for double buffering
    tm = max(16, min(1024, (tm // 16) * 16))            # sublane / bf16-pack aligned
    return int(min(tm, _round_up(m_rows, 16)))


def downsampling_forward(x_nchw, weight, bias, gamma, beta, *, stride,
                         eps=1e-5, block_m=None):
    """Forward of DownSampling: Conv2d -> BatchNorm2d (training-mode statistics).

    x_nchw: (N, Cin, H, W); weight: (Cout, Cin, KH, KW) (PyTorch layouts).
    `bias` is accepted for API parity but intentionally unused: training-mode
    BatchNorm subtracts the per-channel batch mean, which cancels the conv bias
    exactly (verified against the reference which does include it).
    """
    del bias  # mathematically cancelled by the BN mean subtraction
    N, Cin, H, W = x_nchw.shape
    Cout, _, KH, KW = weight.shape
    sh, sw = stride
    ph, pw = KH // 2, KW // 2
    Ho = (H + 2 * ph - KH) // sh + 1
    Wo = (W + 2 * pw - KW) // sw + 1

    M = N * Ho * Wo
    K = KH * KW * Cin
    Cp = _round_up(Cout, LANE)                  # lane-dense output channels

    # ---- generation-aware tile sizing / scoped-VMEM budget ----
    try:
        vmem_cap = int(pltpu.get_tpu_info().vmem_capacity_bytes)
    except Exception:
        vmem_cap = 64 * 1024 * 1024
    vmem_limit = int(min(vmem_cap // 2, 96 * 1024 * 1024))
    tm = block_m if block_m is not None else _pick_block_m(M, K, Cp, vmem_limit // 2)
    Mp = _round_up(M, tm)
    n_tiles = Mp // tm

    # ---- glue: layout conversion + im2col (bf16 to halve HBM traffic) ----
    # TODO(synk): eliminate the KH*KW-fold im2col HBM expansion entirely by passing
    # the padded input with memory_space=pl.ANY and gathering the shifted windows
    # in-kernel with strided pl.ds reads + KH*KW accumulated matmuls.
    x_nhwc = jnp.transpose(x_nchw, (0, 2, 3, 1)).astype(jnp.bfloat16)
    x_pad = jnp.pad(x_nhwc, ((0, 0), (ph, ph), (pw, pw), (0, 0)))
    patch_list = []
    for kh in range(KH):
        for kw in range(KW):
            patch_list.append(
                x_pad[:, kh:kh + Ho * sh:sh, kw:kw + Wo * sw:sw, :])  # (N,Ho,Wo,Cin)
    patches = jnp.stack(patch_list, axis=3).reshape(M, K)
    if Mp != M:
        # Zero rows -> zero conv output rows -> contribute 0 to sum / sum-of-squares.
        patches = jnp.pad(patches, ((0, Mp - M), (0, 0)))

    w_mat = jnp.transpose(weight, (2, 3, 1, 0)).reshape(K, Cout)
    w_mat = jnp.pad(w_mat, ((0, 0), (0, Cp - Cout))).astype(jnp.bfloat16)
    g_row = jnp.pad(gamma.reshape(1, Cout).astype(jnp.float32),
                    ((0, 0), (0, Cp - Cout)))
    b_row = jnp.pad(beta.reshape(1, Cout).astype(jnp.float32),
                    ((0, 0), (0, Cp - Cout)))

    # ---- pass 1: conv tiles + BN statistics -> folded scale/shift ----
    cost1 = pl.CostEstimate(
        flops=2 * Mp * K * Cp,
        transcendentals=Cp,
        bytes_accessed=Mp * K * 2 + K * Cp * 2 + Mp * Cp * 4 + 4 * Cp * 4)
    y_flat, scale_shift = pl.pallas_call(
        functools.partial(_conv_stats_kernel, 1.0 / M, float(eps)),
        out_shape=(jax.ShapeDtypeStruct((Mp, Cp), jnp.float32),
                   jax.ShapeDtypeStruct((2, Cp), jnp.float32)),
        grid=(n_tiles,),
        in_specs=[
            pl.BlockSpec((tm, K), lambda i: (i, 0)),
            pl.BlockSpec((K, Cp), lambda i: (0, 0)),
            pl.BlockSpec((1, Cp), lambda i: (0, 0)),
            pl.BlockSpec((1, Cp), lambda i: (0, 0)),
        ],
        out_specs=(
            pl.BlockSpec((tm, Cp), lambda i: (i, 0)),
            pl.BlockSpec((2, Cp), lambda i: (0, 0)),   # VMEM-resident accumulator
        ),
        compiler_params=pltpu.CompilerParams(
            dimension_semantics=("arbitrary",),        # accumulator lives across M-tiles
            vmem_limit_bytes=vmem_limit),
        cost_estimate=cost1,
    )(patches, w_mat, g_row, b_row)

    # ---- pass 2: normalize (pure FMA, parallel over M tiles / megacore) ----
    cost2 = pl.CostEstimate(
        flops=2 * Mp * Cp,
        transcendentals=0,
        bytes_accessed=2 * Mp * Cp * 4 + 2 * Cp * 4)
    out_flat = pl.pallas_call(
        _normalize_kernel,
        out_shape=jax.ShapeDtypeStruct((Mp, Cp), jnp.float32),
        grid=(n_tiles,),
        in_specs=[
            pl.BlockSpec((tm, Cp), lambda i: (i, 0)),
            pl.BlockSpec((2, Cp), lambda i: (0, 0)),
        ],
        out_specs=pl.BlockSpec((tm, Cp), lambda i: (i, 0)),
        compiler_params=pltpu.CompilerParams(
            dimension_semantics=("parallel",),
            vmem_limit_bytes=vmem_limit),
        cost_estimate=cost2,
    )(y_flat, scale_shift)

    out_nhwc = out_flat[:M, :Cout].reshape(N, Ho, Wo, Cout)
    return jnp.transpose(out_nhwc, (0, 3, 1, 2))        # back to NCHW


# ---------------------------------------------------------------------------
# Pure-JAX reference (conv + bias + training-mode BatchNorm2d)
# ---------------------------------------------------------------------------
def _reference(x_nchw, weight, bias, gamma, beta, *, stride, eps=1e-5):
    """Inputs are rounded to bf16 (math kept in f32) to mirror the bf16 operands
    the Pallas kernel feeds to the MXU; the conv bias IS applied here, which also
    numerically validates that dropping it in the kernel is exact under BN."""
    Cout, Cin, KH, KW = weight.shape
    ph, pw = KH // 2, KW // 2
    x_nhwc = jnp.transpose(x_nchw, (0, 2, 3, 1)).astype(jnp.bfloat16).astype(jnp.float32)
    w_hwio = jnp.transpose(weight, (2, 3, 1, 0)).astype(jnp.bfloat16).astype(jnp.float32)
    y = jax.lax.conv_general_dilated(
        x_nhwc, w_hwio, window_strides=stride,
        padding=[(ph, ph), (pw, pw)],
        dimension_numbers=("NHWC", "HWIO", "NHWC"))
    y = y + bias.reshape(1, 1, 1, Cout)
    mean = jnp.mean(y, axis=(0, 1, 2), keepdims=True)
    var = jnp.mean((y - mean) ** 2, axis=(0, 1, 2), keepdims=True)
    y = (y - mean) * jax.lax.rsqrt(var + eps)
    y = y * gamma.reshape(1, 1, 1, Cout) + beta.reshape(1, 1, 1, Cout)
    return jnp.transpose(y, (0, 3, 1, 2))


if __name__ == "__main__":
    # Module config: DownSampling(in_channels=4, out_channels=8,
    #                             kernel_size=(3, 3), stride=(2, 2))
    N, Cin, H, W = 2, 4, 16, 16
    Cout, KH, KW = 8, 3, 3
    stride = (2, 2)

    key = jax.random.PRNGKey(0)
    kx, kw, kb = jax.random.split(key, 3)

    x = jax.random.normal(kx, (N, Cin, H, W), dtype=jnp.float32)

    # Deterministic parameter init mirroring nn.Conv2d defaults (kaiming-uniform bound)
    fan_in = Cin * KH * KW
    bound = 1.0 / jnp.sqrt(fan_in)
    weight = jax.random.uniform(kw, (Cout, Cin, KH, KW), jnp.float32, -bound, bound)
    bias = jax.random.uniform(kb, (Cout,), jnp.float32, -bound, bound)
    # BatchNorm2d default affine init: gamma = 1, beta = 0
    gamma = jnp.ones((Cout,), jnp.float32)
    beta = jnp.zeros((Cout,), jnp.float32)

    # block_m=64 forces a multi-step grid at this tiny test size so the
    # accumulate / pl.when init+finalize path is exercised (M = 2*8*8 = 128).
    out = downsampling_forward(x, weight, bias, gamma, beta, stride=stride,
                               block_m=64)
    out = jax.block_until_ready(out)

    ref = _reference(x, weight, bias, gamma, beta, stride=stride)
    Ho = (H + 2 * (KH // 2) - KH) // stride[0] + 1
    Wo = (W + 2 * (KW // 2) - KW) // stride[1] + 1
    assert out.shape == (N, Cout, Ho, Wo)
    assert jnp.allclose(out, ref, rtol=1e-3, atol=1e-3), \
        f"max abs err = {jnp.max(jnp.abs(out - ref))}"

    print("KERNEL_OK")
</pallas_src>

<mosaic_0001>
module attributes {stable_mosaic.version = 11 : i64} {
  func.func @_conv_stats_kernel(%arg0: i32, %arg1: memref<64x36xbf16, #tpu.memory_space<vmem>>, %arg2: memref<36x128xbf16, #tpu.memory_space<vmem>>, %arg3: memref<1x128xf32, #tpu.memory_space<vmem>>, %arg4: memref<1x128xf32, #tpu.memory_space<vmem>>, %arg5: memref<64x128xf32, #tpu.memory_space<vmem>>, %arg6: memref<2x128xf32, #tpu.memory_space<vmem>>) attributes {dimension_semantics = [#tpu.dimension_semantics<arbitrary>], iteration_bounds = array<i64: 2>, scalar_prefetch = 0 : i64, scratch_operands = 0 : i64, tpu.core_type = #tpu.core_type<tc>, window_params = [{transform_indices = @transform_0, window_bounds = array<i64: 64, 36>}, {pipeline_mode = #tpu.pipeline_mode<synchronous>, transform_indices = @transform_1, window_bounds = array<i64: 36, 128>}, {pipeline_mode = #tpu.pipeline_mode<synchronous>, transform_indices = @transform_2, window_bounds = array<i64: 1, 128>}, {pipeline_mode = #tpu.pipeline_mode<synchronous>, transform_indices = @transform_3, window_bounds = array<i64: 1, 128>}, {transform_indices = @transform_4, window_bounds = array<i64: 64, 128>}, {pipeline_mode = #tpu.pipeline_mode<synchronous>, transform_indices = @transform_5, window_bounds = array<i64: 2, 128>}]} {
    %c0 = arith.constant 0 : index
    %c0_0 = arith.constant 0 : index
    %0 = vector.load %arg1[%c0, %c0_0] : memref<64x36xbf16, #tpu.memory_space<vmem>>, vector<64x36xbf16>
    %c0_1 = arith.constant 0 : index
    %c0_2 = arith.constant 0 : index
    %1 = vector.load %arg2[%c0_1, %c0_2] : memref<36x128xbf16, #tpu.memory_space<vmem>>, vector<36x128xbf16>
    %cst = arith.constant dense<0.000000e+00> : vector<64x128xf32>
    %2 = tpu.matmul %0, %1, %cst {dimension_numbers = #tpu.dot_dimension_numbers<[1], [0], [0], [1], [0, 0, 1, 1], [], []>} : vector<64x36xbf16>, vector<36x128xbf16>, vector<64x128xf32> -> vector<64x128xf32>
    %c0_3 = arith.constant 0 : index
    %c0_4 = arith.constant 0 : index
    %3 = vector.load %arg5[%c0_3, %c0_4] : memref<64x128xf32, #tpu.memory_space<vmem>>, vector<64x128xf32>
    tpu.vector_store %arg5[%c0_3, %c0_4], %2 {strides = array<i32>} : memref<64x128xf32, #tpu.memory_space<vmem>>, vector<64x128xf32>,
    %c0_i32 = arith.constant 0 : i32
    %4 = arith.cmpi eq, %arg0, %c0_i32 : i32
    %5 = arith.extui %4 : i1 to i32
    %c0_i32_5 = arith.constant 0 : i32
    %6 = arith.cmpi ne, %5, %c0_i32_5 : i32
    scf.if %6 {
      %cst_13 = arith.constant 0.000000e+00 : f32
      %19 = vector.broadcast %cst_13 : f32 to vector<2x128xf32>
      %c0_14 = arith.constant 0 : index
      %c0_15 = arith.constant 0 : index
      %20 = vector.load %arg6[%c0_14, %c0_15] : memref<2x128xf32, #tpu.memory_space<vmem>>, vector<2x128xf32>
      tpu.vector_store %arg6[%c0_14, %c0_15], %19 {strides = array<i32>} : memref<2x128xf32, #tpu.memory_space<vmem>>, vector<2x128xf32>,
    } else {
    }
    %cst_6 = arith.constant dense<0.000000e+00> : vector<128xf32>
    %7 = vector.multi_reduction <add>, %2, %cst_6 [0] : vector<64x128xf32> to vector<128xf32>
    %8 = vector.shape_cast %7 : vector<128xf32> to vector<1x128xf32>
    %9 = arith.mulf %2, %2 : vector<64x128xf32>
    %cst_7 = arith.constant dense<0.000000e+00> : vector<128xf32>
    %10 = vector.multi_reduction <add>, %9, %cst_7 [0] : vector<64x128xf32> to vector<128xf32>
    %11 = vector.shape_cast %10 : vector<128xf32> to vector<1x128xf32>
    %c0_8 = arith.constant 0 : index
    %c0_9 = arith.constant 0 : index
    %12 = vector.load %arg6[%c0_8, %c0_9] : memref<2x128xf32, #tpu.memory_space<vmem>>, vector<2x128xf32>
    %13 = tpu.concatenate %8, %11 in 0 : vector<1x128xf32>, vector<1x128xf32> -> vector<2x128xf32>
    %14 = arith.addf %12, %13 : vector<2x128xf32>
    %c0_10 = arith.constant 0 : index
    %c0_11 = arith.constant 0 : index
    %15 = vector.load %arg6[%c0_10, %c0_11] : memref<2x128xf32, #tpu.memory_space<vmem>>, vector<2x128xf32>
    tpu.vector_store %arg6[%c0_10, %c0_11], %14 {strides = array<i32>} : memref<2x128xf32, #tpu.memory_space<vmem>>, vector<2x128xf32>,
    %c1_i32 = arith.constant 1 : i32
    %16 = arith.cmpi eq, %arg0, %c1_i32 : i32
    %17 = arith.extui %16 : i1 to i32
    %c0_i32_12 = arith.constant 0 : i32
    %18 = arith.cmpi ne, %17, %c0_i32_12 : i32
    scf.if %18 {
      %c0_13 = arith.constant 0 : index
      %c0_14 = arith.constant 0 : index
      %19 = vector.load %arg6[%c0_13, %c0_14] : memref<2x128xf32, #tpu.memory_space<vmem>>, vector<2x128xf32>
      %20 = vector.extract_strided_slice %19 {offsets = [0, 0], sizes = [1, 128], strides = [1, 1]} : vector<2x128xf32> to vector<1x128xf32>
      %cst_15 = arith.constant 7.812500e-03 : f32
      %21 = vector.broadcast %cst_15 : f32 to vector<1x128xf32>
      %22 = arith.mulf %20, %21 : vector<1x128xf32>
      %23 = vector.extract_strided_slice %19 {offsets = [1, 0], sizes = [1, 128], strides = [1, 1]} : vector<2x128xf32> to vector<1x128xf32>
      %cst_16 = arith.constant 7.812500e-03 : f32
      %24 = vector.broadcast %cst_16 : f32 to vector<1x128xf32>
      %25 = arith.mulf %23, %24 : vector<1x128xf32>
      %26 = arith.mulf %22, %22 : vector<1x128xf32>
      %27 = arith.subf %25, %26 : vector<1x128xf32>
      %cst_17 = arith.constant 9.99999974E-6 : f32
      %28 = vector.broadcast %cst_17 : f32 to vector<1x128xf32>
      %29 = arith.addf %27, %28 : vector<1x128xf32>
      %30 = math.rsqrt %29 : vector<1x128xf32>
      %c0_18 = arith.constant 0 : index
      %c0_19 = arith.constant 0 : index
      %31 = vector.load %arg3[%c0_18, %c0_19] : memref<1x128xf32, #tpu.memory_space<vmem>>, vector<1x128xf32>
      %32 = arith.mulf %31, %30 : vector<1x128xf32>
      %c0_20 = arith.constant 0 : index
      %c0_21 = arith.constant 0 : index
      %33 = vector.load %arg4[%c0_20, %c0_21] : memref<1x128xf32, #tpu.memory_space<vmem>>, vector<1x128xf32>
      %34 = arith.mulf %22, %32 : vector<1x128xf32>
      %35 = arith.subf %33, %34 : vector<1x128xf32>
      %36 = tpu.concatenate %32, %35 in 0 : vector<1x128xf32>, vector<1x128xf32> -> vector<2x128xf32>
      %c0_22 = arith.constant 0 : index
      %c0_23 = arith.constant 0 : index
      %37 = vector.load %arg6[%c0_22, %c0_23] : memref<2x128xf32, #tpu.memory_space<vmem>>, vector<2x128xf32>
      tpu.vector_store %arg6[%c0_22, %c0_23], %36 {strides = array<i32>} : memref<2x128xf32, #tpu.memory_space<vmem>>, vector<2x128xf32>,
    } else {
    }
    return
  }
  func.func @transform_0(%arg0: i32) -> (i32, i32) {
    %c0_i32 = arith.constant 0 : i32
    %c0_i32_0 = arith.constant 0 : i32
    return %arg0, %c0_i32 : i32, i32
  }
  func.func @transform_1(%arg0: i32) -> (i32, i32) {
    %c0_i32 = arith.constant 0 : i32
    %c0_i32_0 = arith.constant 0 : i32
    %c0_i32_1 = arith.constant 0 : i32
    return %c0_i32, %c0_i32_0 : i32, i32
  }
  func.func @transform_2(%arg0: i32) -> (i32, i32) {
    %c0_i32 = arith.constant 0 : i32
    %c0_i32_0 = arith.constant 0 : i32
    %c0_i32_1 = arith.constant 0 : i32
    return %c0_i32, %c0_i32_0 : i32, i32
  }
  func.func @transform_3(%arg0: i32) -> (i32, i32) {
    %c0_i32 = arith.constant 0 : i32
    %c0_i32_0 = arith.constant 0 : i32
    %c0_i32_1 = arith.constant 0 : i32
    return %c0_i32, %c0_i32_0 : i32, i32
  }
  func.func @transform_4(%arg0: i32) -> (i32, i32) {
    %c0_i32 = arith.constant 0 : i32
    %c0_i32_0 = arith.constant 0 : i32
    return %arg0, %c0_i32 : i32, i32
  }
  func.func @transform_5(%arg0: i32) -> (i32, i32) {
    %c0_i32 = arith.constant 0 : i32
    %c0_i32_0 = arith.constant 0 : i32
    %c0_i32_1 = arith.constant 0 : i32
    return %c0_i32, %c0_i32_0 : i32, i32
  }
}

</mosaic_0001>

<bundles_post_ra>
// kernel: tpu_custom_call.1
= control target key start
LH: loop header
LB: loop body
LE: loop exit
PB: predicated region body
PF: predicated region fallthrough
CT: control target
= control target key end

     0   :  { %11 = vsyncpa [#allocation3], 0  ;;  %s955_s0 = inlined_call_operand.vmem [shape: bf16[128,36], index: 0, kind: input, shape index: {}]   ;;  %s956_s1 = inlined_call_operand.vmem [shape: bf16[36,128], index: 1, kind: input, shape index: {}]   ;;  %s957_s2 = inlined_call_operand.vmem [shape: f32[1,128], index: 2, kind: input, shape index: {}]   ;;  %s958_s3 = inlined_call_operand.vmem [shape: f32[1,128], index: 3, kind: input, shape index: {}]   ;;  %s959_s4 = inlined_call_operand.hbm [shape: f32[128,128], index: 4, kind: output, shape index: {0}]   ;;  %s960_s5 = inlined_call_operand.hbm [shape: f32[2,128], index: 5, kind: output, shape index: {1}]  }
   0x1   :  { %13 = vsyncpa [#allocation3 + $0x1], 0 }
   0x2   :  { %14 = vsyncpa [#allocation5], 0  ;;  %s795_s18 = smov 0   ;;  %s797_s19 = smov 0  }
   0x3   :  { %s799_s20 = smov 0   ;;  %s801_s21 = smov 0  }
   0x4 LB: > { %s816_s22 = sadd.s32 4294967295, %s757_s21   ;;  %s549_s23 = sadd.s32 4294967294, %s757_s21   ;;  %s757_s21 = sphi %s801_s21, %s966_s21   ;;  %s753_s20 = sphi %s799_s20, %s965_s20   ;;  %s749_s19 = sphi %s797_s19, %s964_s19   ;;  %s745_s18 = sphi %s795_s18, %s963_s18  }
   0x5   : > { %s820_s24 = sadd.s32 1, %s757_s21   ;;  %s116_s25 = sadd.s32 1, %s753_s20 }
   0x6   : > { %s113_s26 = ssub.s32 %s757_s21, %s820_s24  ;;  %p126_p0 = scmp.ne.s32.totalorder %s753_s20, %s749_s19 }
   0x7   : > { %p114_p1 = scmp.eq.s32.totalorder %s113_s26, 0  ;;  %p127_p2 = scmp.eq.s32.totalorder %s816_s22, 1 }
   0x8   : > { %p132_p3 = scmp.ne.s32.totalorder %s749_s19, %s745_s18  ;;  %p133_p4 = scmp.eq.s32.totalorder %s549_s23, 1 }
   0x9   : > { %s831_s27 = scalar_select %p114_p1, %s753_s20, %s116_s25  }
   0xa   : > { %p835_p5 = por %p127_p2, %p126_p0  ;;  %p839_p6 = por %p133_p4, %p132_p3 }
   0xb   : > { %p552_p7 = scmp.ge.s32.totalorder %s757_s21, 1  ;;  %p190_p8 = scmp.lt.s32.totalorder %s757_s21, 3 }
   0xd   : > { %p191_p9 = pnand %p552_p7, %p190_p8 }
   0xe   : > { %v656_v0 = vld [vmem:[%s956_s1] sm:$0xff] (!%p191_p9)   ;;  %v657_v1 = vld [vmem:[%s956_s1 + $0x8] sm:$0xff] (!%p191_p9)   ;;  %s554_s9 = sshll.u32 (!%p191_p9), %s816_s22, 3  ;;  %v658_v2 = vld [vmem:[%s956_s1 + $0x10] ss:$0 sps:$4 sm:$0x33] (!%p191_p9)  }
   0xf   : > { %194 = sbr.rel (%p191_p9) target bundleno = 369 (0x171), region = 36  ;;  %584 = vmatprep.subr.bf16.mxu0 (!%p191_p9), %v656_v0  ;;  %598 = vmatprep.subr.bf16.mxu1 (!%p191_p9), %v656_v0  ;;  %p219_p10 = scmp.lt.s32.totalorder (!%p191_p9), %s554_s9, 15  ;;  %vm287_vm0 = vcmask (!%p191_p9), 1041408   ;;  %vm274_vm1 = vcmask (!%p191_p9), 293888  }
  0x10   : > { %585 = vmatpush3.bf16.msra.mxu0 (!%p191_p9), %v656_v0  ;;  %601 = vmatpush3.bf16.msra.mxu1 (!%p191_p9), %v656_v0  ;;  %v289_v3 = vsel (!%p191_p9), %vm287_vm0, %v658_v2, 0  ;;  %s213_s16 = sand.u32 (!%p191_p9), 1, %s749_s19   ;;  %p567_p11 = scmp.ne.s32.totalorder (!%p191_p9), %s816_s22, 0 }
  0x11   : > { %586 = vmatprep.subr.bf16.mxu0 (!%p191_p9), %v657_v1  ;;  %599 = vmatprep.subr.bf16.mxu1 (!%p191_p9), %v657_v1  ;;  %s553_s17 = sshll.u32 (!%p191_p9), %s213_s16, 6 }
  0x12   : > { %s861_s23 = scalar_lea.vmem (!%p191_p9), [#allocation2], %s553_s17 }
  0x14   : > { %587 = vmatpush3.bf16.msra.mxu0 (!%p191_p9), %v657_v1  ;;  %602 = vmatpush3.bf16.msra.mxu1 (!%p191_p9), %v657_v1 }
  0x15   : > { %604 = vmatprep.subr.msk.bf16.mxu0 (!%p191_p9), %vm287_vm0, %v658_v2  ;;  %605 = vmatprep.subr.msk.bf16.mxu1 (!%p191_p9), %vm287_vm0, %v658_v2 }
  0x16   : > { %s968_s9 = smov (!%p219_p10, %s554_s9), 15  ;;  %v759_v16 = vmov (!%p567_p11), 0.0  }
  0x17   : > { %s555_s12 = sshll.u32 %s968_s9, 2  ;;  %368 = vst [vmem:[#allocation4] sm:$0x3] (!%p567_p11), %v759_v16 }
  0x18   : > { %s222_s15 = scalar_lea.vmem %s955_s0, %s555_s12  ;;  %589 = vmatpush3.bf16.msra.mxu0 %v289_v3  ;;  %603 = vmatpush3.bf16.msra.mxu1 %v289_v3 }
  0x19   : > { %v659_v4 = vld [vmem:[%s222_s15] sm:$0xff]   ;;  %v660_v5 = vld [vmem:[%s222_s15 + $0x10] sm:$0xff]   ;;  %v661_v6 = vld [vmem:[%s222_s15 + $0x8] sm:$0xff]  }
  0x1a   : > { %590 = vmatprep.mubr.msk.bf16.mxu0 %vm274_vm1, %v659_v4  ;;  %v662_v7 = vld [vmem:[%s222_s15 + $0x18] sm:$0xff]   ;;  %594 = vmatprep.mubr.msk.bf16.mxu1 %vm274_vm1, %v660_v5 }
  0x1b   : > { %591 = vmatmul.mubr.msk.bf16.vlgmr.msra.gmra.mrb[0].mxu0 %vm274_vm1, %v661_v6  ;;  %595 = vmatmul.mubr.msk.bf16.vlgmr.msra.gmra.mrb[0].mxu1 %vm274_vm1, %v662_v7 }
  0xec   : > { %367 = sbr.rel (%p567_p11) target bundleno = 243 (0xf3), region = 40 }
  0xee   : > { %v592_v8 = vpop.f32.mrb[0].mxu0  ;;  %v596_v9 = vpop.f32.mrb[0].mxu1 }
  0xef   : > { %358 = vst [vmem:[%s861_s23 + $0x10] sm:$0xff] %v592_v8  ;;  %362 = vst [vmem:[%s861_s23 + $0x30] sm:$0xff] %v596_v9  ;;  %v325_v10 = vpop.f32.mrb[1].mxu0  ;;  %v341_v11 = vpop.f32.mrb[1].mxu1 }
  0xf0   : > { %356 = vst [vmem:[%s861_s23] sm:$0xff] %v325_v10  ;;  %360 = vst [vmem:[%s861_s23 + $0x20] sm:$0xff] %v341_v11  ;;  %v593_v12 = vpop.f32.mrb[2].mxu0  ;;  %v597_v13 = vpop.f32.mrb[2].mxu1 }
  0xf1   : > { %359 = vst [vmem:[%s861_s23 + $0x18] sm:$0xff] %v593_v12  ;;  %363 = vst [vmem:[%s861_s23 + $0x38] sm:$0xff] %v597_v13  ;;  %v328_v14 = vpop.f32.mrb[3].mxu0  ;;  %v344_v15 = vpop.f32.mrb[3].mxu1 }
  0xf2   : > { %357 = vst [vmem:[%s861_s23 + $0x8] sm:$0xff] %v328_v14  ;;  %361 = vst [vmem:[%s861_s23 + $0x28] sm:$0xff] %v344_v15 }
  0xf3 PF: > { %v369_v17 = vadd.f32 %v328_v14, %v325_v10  ;;  %v382_v18 = vmul.f32 %v325_v10, %v325_v10  ;;  %v383_v19 = vmul.f32 %v328_v14, %v328_v14  ;;  %v384_v20 = vmul.f32 %v592_v8, %v592_v8  ;;  %v403_v51 = vld [vmem:[#allocation4] sm:$0x3]  ;;  %p568_p12 = scmp.ne.s32.totalorder %s816_s22, 1 }
  0xf4   : > { %v385_v22 = vmul.f32 %v593_v12, %v593_v12  ;;  %v386_v25 = vmul.f32 %v341_v11, %v341_v11  ;;  %v387_v28 = vmul.f32 %v344_v15, %v344_v15  ;;  %v388_v31 = vmul.f32 %v596_v9, %v596_v9  ;;  %v421_v5 = vld [vmem:[%s957_s2] sm:$0x1] (!%p568_p12) }
  0xf5   : > { %v370_v21 = vadd.f32 %v592_v8, %v369_v17  ;;  %v390_v23 = vadd.f32 %v383_v19, %v382_v18  ;;  %v389_v34 = vmul.f32 %v597_v13, %v597_v13  ;;  %vm404_vm2 = vcmask 1040384   ;;  %v440_v8 = vld [vmem:[%s958_s3] sm:$0x1] (!%p568_p12) }
  0xf6   : > { %v760_v60 = vmov (!%p568_p12), 1966171168   ;;  %v426_v62 = vlaneseq (!%p568_p12) }
  0xf7   : > { %v371_v24 = vadd.f32 %v593_v12, %v370_v21  ;;  %v391_v26 = vadd.f32 %v390_v23, %v384_v20  ;;  %v424_v61 = vunpack.c.l.s4 (!%p568_p12), %v760_v60 }
  0xf8   : > { %v427_v0 = vshrl.u32 (!%p568_p12), %v426_v62, 7 }
  0xf9   : > { %v372_v27 = vadd.f32 %v371_v24, %v341_v11  ;;  %v392_v29 = vadd.f32 %v391_v26, %v385_v22  ;;  %v425_v63 = vunpack.c.0.s8 (!%p568_p12), %v424_v61 }
  0xfa   : > { %v446_v10 = vsub.s32 (!%p568_p12), 0, %v427_v0 }
  0xfb   : > { %v373_v30 = vadd.f32 %v372_v27, %v344_v15  ;;  %v393_v32 = vadd.f32 %v392_v29, %v386_v25  ;;  %v428_v1 = vsub.s32 (!%p568_p12), %v425_v63, %v427_v0 }
  0xfd   : > { %v374_v33 = vadd.f32 %v596_v9, %v373_v30  ;;  %v394_v35 = vadd.f32 %v393_v32, %v387_v28 }
  0xff   : > { %v375_v36 = vadd.f32 %v597_v13, %v374_v33  ;;  %v395_v37 = vadd.f32 %v394_v35, %v388_v31 }
 0x101   : > { %v376_v38 = vrot.slane %v375_v36, 4  ;;  %v396_v39 = vadd.f32 %v395_v37, %v389_v34 }
 0x103   : > { %v377_v40 = vadd.f32 %v376_v38, %v375_v36  ;;  %v397_v41 = vrot.slane %v396_v39, 4 }
 0x105   : > { %v378_v42 = vrot.slane %v377_v40, 2  ;;  %v398_v43 = vadd.f32 %v397_v41, %v396_v39 }
 0x107   : > { %v379_v44 = vadd.f32 %v378_v42, %v377_v40  ;;  %v399_v45 = vrot.slane %v398_v43, 2 }
 0x109   : > { %v380_v46 = vrot.slane %v379_v44, 1  ;;  %v400_v47 = vadd.f32 %v399_v45, %v398_v43 }
 0x10b   : > { %v381_v48 = vadd.f32 %v380_v46, %v379_v44  ;;  %v401_v49 = vrot.slane %v400_v47, 1 }
 0x10c   : > { %411 = sbr.rel (%p568_p12) target bundleno = 319 (0x13f), region = 44 }
 0x10d   : > { %v402_v50 = vadd.f32 %v401_v49, %v400_v47 }
 0x10f   : > { %v405_v52 = vsel %vm404_vm2, %v381_v48, %v402_v50 }
 0x110   : > { %v406_v53 = vadd.f32 %v405_v52, %v403_v51 }
 0x112   : > { %407 = vst [vmem:[#allocation4] sm:$0x3] %v406_v53 }
 0x119   : > { %v412_v54 = vld [vmem:[#allocation4] sm:$0x3] }
 0x11a   : > { %v413_v55 = vmul.f32 0.0078125, %v412_v54 }
 0x11c   : > { %v414_v56 = vmul.f32 %v413_v55, %v413_v55 }
 0x11e   : > { %v416_v57 = vrot.slane %v414_v56, 7 }
 0x120   : > { %v418_v58 = vsub.f32 %v413_v55, %v416_v57 }
 0x122   : > { %v419_v59 = vadd.f32 1e-05, %v418_v58 }
 0x124   : > { %663 = vrsqrt.f32 %v419_v59 }
 0x12e   : > { %v664_v2 = vpop.eup %663 }
 0x12f   : > { %v429_v3 = vrot.slane %v664_v2, %v428_v1 }
 0x131   : > { %v430_v4 = vcombine.high %v429_v3, %v429_v3 }
 0x133   : > { %v437_v6 = vrot.slane %v430_v4, %v428_v1 }
 0x135   : > { %v439_v7 = vmul.f32 %v437_v6, %v421_v5 }
 0x137   : > { %v441_v9 = vmul.f32 %v439_v7, %v413_v55 }
 0x139   : > { %v442_v11 = vsub.f32 %v440_v8, %v441_v9 }
 0x13b   : > { %v447_v12 = vrot.slane %v442_v11, %v446_v10 }
 0x13d   : > { %v449_v13 = vsel %vm404_vm2, %v439_v7, %v447_v12 }
 0x13e   : > { %450 = vst [vmem:[#allocation4] sm:$0x3] %v449_v13 }
 0x13f PF: > { %s576_s7 = sshll.u32 %s816_s22, 10  ;;  %s465_s11 = sshll.u32 %s861_s23, 4  ;;  %s888_s11 = int_to_ptr.vmem [resolvable:$true] %s465_s11 }
 0x140   : > { %s885_s10 = scalar_lea.hbm %s959_s4, %s576_s7  ;;  %s892_s12 = scalar_lea.sflag [#allocation3], %s213_s16 }
 0x141   : > { %s665_s13 = scalar_lea.vmem %s888_s11, 1024  ;;  %s761_s14 = smov [#allocation2]  }
 0x142   : > { %p666_p13 = scmp.ne.s32.totalorder %s888_s11, %s665_s13  ;;  %s669_s15 = sshll.u32 %s761_s14, 4  ;;  %s670_s15 = int_to_ptr.vmem [resolvable:$false] %s669_s15 }
 0x143   : > { %s671_s17 = scalar_lea.vmem %s670_s15, 2048  ;;  %p672_p3 = scmp.lt.s32.totalorder %s888_s11, %s670_s15 }
 0x144   : > { %p667_p0 = pnand %p666_p13, %p835_p5  ;;  %p673_p4 = scmp.lt.s32.totalorder %s671_s17, %s665_s13 }
 0x146   : > { %p668_p1 = pneg %p667_p0  ;;  %p674_p7 = por %p673_p4, %p672_p3 }
 0x148   : > { %p675_p8 = pnand %p674_p7, %p668_p1 }
 0x14a   : > { %678 = shalt.err (!%p675_p8)
}
 0x14b   : > { %s679_s16 = scalar_lea.hbm %s885_s10, 1024  ;;  %s683_s26 = scalar_lea.hbm %s959_s4, 2048 }
 0x14c   : > { %p680_p9 = scmp.ne.s32.totalorder %s885_s10, %s679_s16  ;;  %p684_p12 = scmp.lt.u32.totalorder %s885_s10, %s959_s4 }
 0x14d   : > { %p685_p13 = scmp.lt.u32.totalorder %s683_s26, %s679_s16  ;;  %p687_p1 = scmp.lt.u32.totalorder %s679_s16, %s885_s10 }
 0x14e   : > { %p681_p10 = pnand %p680_p9, %p835_p5 }
 0x14f   : > { %p686_p0 = por %p685_p13, %p684_p12 }
 0x150   : > { %p682_p11 = pneg %p681_p10 }
 0x151   : > { %p688_p3 = por %p687_p1, %p686_p0 }
 0x153   : > { %p689_p4 = pnand %p688_p3, %p682_p11 }
 0x155   : > { %692 = shalt.err (!%p689_p4)
}
 0x156   : > { %s762_s7 = smov 128   ;;  %s763_s8 = smov 8  }
 0x157   : > { %606 = dma.vmem_to_hbm [thread:$0]  (%p835_p5), %s888_s11, 1024, %s885_s10, %s892_s12, %s762_s7, %s762_s7, %s763_s8  }
 0x158   : > { %s764_s9 = smov [#allocation4]  }
 0x159   : > { %s479_s13 = sshll.u32 %s764_s9, 4  ;;  %s480_s13 = int_to_ptr.vmem [resolvable:$true] %s479_s13 }
 0x15a   : > { %s693_s14 = scalar_lea.vmem %s480_s13, 32  ;;  %p700_p10 = scmp.lt.s32.totalorder %s480_s13, %s480_s13 }
 0x15b   : > { %p694_p7 = scmp.ne.s32.totalorder %s480_s13, %s693_s14  ;;  %p701_p11 = scmp.lt.s32.totalorder %s693_s14, %s693_s14 }
 0x15d   : > { %p695_p8 = pnand %p694_p7, %p127_p2  ;;  %p702_p12 = por %p701_p11, %p700_p10 }
 0x15f   : > { %p696_p9 = pneg %p695_p8 }
 0x161   : > { %p703_p13 = pnand %p702_p12, %p696_p9 }
 0x163   : > { %706 = shalt.err (!%p703_p13)
}
 0x164   : > { %s707_s16 = scalar_lea.hbm %s960_s5, 32 }
 0x165   : > { %p708_p5 = scmp.ne.s32.totalorder %s960_s5, %s707_s16  ;;  %p713_p3 = scmp.lt.u32.totalorder %s707_s16, %s960_s5 }
 0x167   : > { %p709_p0 = pnand %p708_p5, %p127_p2 }
 0x169   : > { %p710_p1 = pneg %p709_p0 }
 0x16b   : > { %p715_p4 = pnand %p713_p3, %p710_p1 }
 0x16d   : > { %718 = shalt.err (!%p715_p4)
}
 0x16e   : > { %608 = dma.vmem_to_hbm [thread:$0]  (%p127_p2), %s480_s13, 32, %s960_s5, [#allocation5]  }
 0x16f   : > { %736 = dma.done.wait (%p127_p2), [#allocation5], 32  }
 0x170   : > { %738 = vsyncadd (%p127_p2), [#allocation5], 4294967264 }
 0x171 PF: > { %p618_p7 = scmp.ge.s32.totalorder %s757_s21, 2  ;;  %s495_s26 = sand.u32 1, %s745_s18  }
 0x172   : > { %s496_s30 = scalar_lea.sflag [#allocation3], %s495_s26 }
 0x173   : > { %p613_p8 = pnand %p618_p7, %p839_p6 }
 0x175   : > { %740 = dma.done.wait (!%p613_p8), %s496_s30, 1024  }
 0x176   : > { %742 = vsyncadd (!%p613_p8), %s496_s30, 4294966272  ;;  %p17_p9 = scmp.ge.s32.totalorder %s820_s24, 4   ;;  %s963_s18 = smov %s749_s19 }
 0x177   : > { %s964_s19 = smov %s753_s20  ;;  %s965_s20 = smov %s831_s27 }
 0x178   : > { %s966_s21 = smov %s820_s24  ;;  %19 = sbr.rel (!%p17_p9) target bundleno = 4 (0x4), region = 87 }
 0x17f   :  { %501 = vsyncpa [#allocation3], 1 }
 0x180   :  { %503 = vsyncpa [#allocation3 + $0x1], 1 }
 0x181   :  { %504 = vsyncpa [#allocation5], 1 }

</bundles_post_ra>
